<compile_context>
chip_gen: v7x
topology: tpu7x:2x2x1
jax: 0.10.0
libtpu: 0.0.40
codegen_flags: <defaults>
</compile_context>

<pallas_src>
import jax
import jax.numpy as jnp
from jax import lax
from jax.experimental import pallas as pl
from jax.experimental.pallas import tpu as pltpu


def _make_decoder_kernel(HO, L):
    """Kernel factory; HO = output rows per image, L = WO*Cout output lanes."""

    def kernel(xe_ref, skip_ref, wu_ref, m1_ref, m2_ref, bias_ref, out_ref):
        f32, bf16 = jnp.float32, jnp.bfloat16

        rid = lax.broadcasted_iota(jnp.int32, (HO, 1), 0)
        even = (rid % 2) == 0
        first = rid == 0
        last = rid == HO - 1

        def taps(a):
            # out[r] needs input rows r-1 / r / r+1 (zero outside the image).
            # Row shifts run on the XLU (roll) + VPU (mask), not the MXU.
            prev = jnp.where(first, 0.0, pltpu.roll(a, shift=1, axis=0))
            nxt = jnp.where(last, 0.0, pltpu.roll(a, shift=HO - 1, axis=0))
            return jnp.concatenate([prev, a, nxt], axis=1).astype(bf16)

        # ---- ConvTranspose2d(kernel=2, stride=2) + bias ----
        # Input rows are pre-repeated (wrapper), so one lane-dense matmul
        # produces both row phases; a parity select replaces the old
        # K=16 interleave matmuls.
        upc = jnp.dot(xe_ref[...], wu_ref[...], preferred_element_type=f32)
        up = jnp.where(even, upc[:, :L], upc[:, L:]) + bias_ref[0]   # (HO, L) f32

        # ---- conv1 3x3 SAME over concat([up, skip], channel) + ReLU ----
        # up/skip channels and the 3 dy taps are all stacked along K:
        # a single (HO, 3*WO*Ccat) x (3*WO*Ccat, L) bf16 matmul.
        cat = jnp.concatenate([up, skip_ref[...].astype(f32)], axis=1)
        h1 = jnp.dot(taps(cat), m1_ref[...], preferred_element_type=f32)
        h1 = jnp.maximum(h1 + bias_ref[1], 0.0)                      # (HO, L) f32

        # ---- conv2 3x3 SAME + ReLU: single (HO, 3*WO*Cout) x (.., L) matmul
        h2 = jnp.dot(taps(h1), m2_ref[...], preferred_element_type=f32)
        out_ref[...] = jnp.maximum(h2 + bias_ref[2], 0.0)

    return kernel


def pack_decoder_params(wt, bt, w1, b1, w2, b2, *, spatial):
    """One-time repack of PyTorch-layout params into MXU-friendly matrices.

    Call once and cache the result; it is deliberately NOT in the per-call
    forward path (the kron construction is the expensive part).

    wt: (Cin, Cout, 2, 2) ConvTranspose2d weight,  bt: (Cout,)
    w1: (Cout, Ccat, 3, 3) conv1 weight (OIHW),    b1: (Cout,)
    w2: (Cout, Cout, 3, 3) conv2 weight (OIHW),    b2: (Cout,)
    spatial: (H, W) of the decoder input x.
    """
    f32, bf16 = jnp.float32, jnp.bfloat16
    H, W = spatial
    WO = 2 * W
    Cin, Cout = wt.shape[0], wt.shape[1]
    Ccat = w1.shape[1]

    # ConvTranspose2d(k=2, s=2): per output-row phase ky a block-diagonal
    # (W*Cin, WO*Cout) matrix; both phases concatenated along lanes.
    wt_f = wt.astype(f32)
    wu = jnp.concatenate([
        jnp.kron(jnp.eye(W, dtype=f32),
                 jnp.transpose(wt_f[:, :, ky, :], (0, 2, 1)).reshape(Cin, 2 * Cout))
        for ky in range(2)], axis=1)                       # (W*Cin, 2*WO*Cout)

    def banded(w_hwio, dy):  # (3,3,Ci,Co), dy -> (WO*Ci, WO*Co) lowered filter
        return sum(jnp.kron(jnp.eye(WO, k=1 - dx, dtype=f32), w_hwio[dy, dx])
                   for dx in range(3))

    w1_hwio = jnp.transpose(w1, (2, 3, 1, 0)).astype(f32)  # (3,3,Ccat,Cout)
    w2_hwio = jnp.transpose(w2, (2, 3, 1, 0)).astype(f32)  # (3,3,Cout,Cout)

    # conv1: per dy, K-block = [up lanes | skip lanes]; 3 dy blocks stacked
    # along K so the kernel does a single large-K matmul.
    m1 = jnp.concatenate([
        jnp.concatenate([banded(w1_hwio[:, :, :Cout, :], dy),    # up channels
                         banded(w1_hwio[:, :, Cout:, :], dy)],   # skip channels
                        axis=0)
        for dy in range(3)], axis=0)                        # (3*WO*Ccat, WO*Cout)
    m2 = jnp.concatenate([banded(w2_hwio, dy) for dy in range(3)],
                         axis=0)                            # (3*WO*Cout, WO*Cout)

    bias = jnp.stack([jnp.tile(bt.astype(f32), WO),
                      jnp.tile(b1.astype(f32), WO),
                      jnp.tile(b2.astype(f32), WO)],
                     axis=0).reshape(3, 1, WO * Cout)       # f32 (biases stay f32)

    return dict(wu=wu.astype(bf16), m1=m1.astype(bf16), m2=m2.astype(bf16),
                bias=bias)


def decoder_block(packed, x_nchw, skip_nchw):
    """DecoderBlock forward.  NCHW in / NCHW out; `packed` from pack_decoder_params."""
    f32, bf16 = jnp.float32, jnp.bfloat16
    N, Cin, H, W = x_nchw.shape
    _, Cskip, HO, WO = skip_nchw.shape
    assert HO == 2 * H and WO == 2 * W
    L = packed["bias"].shape[-1]            # WO * Cout
    Cout = L // WO
    Lc = WO * (Cout + Cskip)                # concat lane width

    # Activations -> lane-packed rows (rows = image rows, lanes = W*C), bf16.
    # Rows of x are repeated 2x so row 2i/2i+1 feed both ConvTranspose phases.
    x_rows = jnp.transpose(x_nchw, (0, 2, 3, 1)).reshape(N * H, W * Cin)
    xe = jnp.repeat(x_rows, 2, axis=0).astype(bf16)                 # (N*HO, W*Cin)
    skip_rows = jnp.transpose(skip_nchw, (0, 2, 3, 1)) \
                   .reshape(N * HO, WO * Cskip).astype(bf16)        # (N*HO, WO*Cskip)

    kernel = _make_decoder_kernel(HO, L)

    flops = 2 * N * HO * ((W * Cin) * 2 * L + (3 * Lc) * L + (3 * L) * L)
    bytes_accessed = (
        2 * (xe.size + skip_rows.size)                              # bf16 acts
        + 2 * (packed["wu"].size + packed["m1"].size + packed["m2"].size)
        + 4 * packed["bias"].size
        + 4 * N * HO * L)                                           # f32 output

    grid_spec = pltpu.PrefetchScalarGridSpec(
        num_scalar_prefetch=0,
        grid=(N,),                                     # batch: parallel (v7x 2 TCs)
        in_specs=[
            pl.BlockSpec((HO, W * Cin), lambda n: (n, 0)),
            pl.BlockSpec((HO, WO * Cskip), lambda n: (n, 0)),
            pl.BlockSpec((W * Cin, 2 * L), lambda n: (0, 0)),       # weights: fixed
            pl.BlockSpec((3 * Lc, L), lambda n: (0, 0)),            # block -> fetched
            pl.BlockSpec((3 * L, L), lambda n: (0, 0)),             # once, not per step
            pl.BlockSpec((3, 1, L), lambda n: (0, 0, 0)),
        ],
        out_specs=pl.BlockSpec((HO, L), lambda n: (n, 0)),
    )

    out2d = pl.pallas_call(
        kernel,
        out_shape=jax.ShapeDtypeStruct((N * HO, L), f32),
        grid_spec=grid_spec,
        compiler_params=pltpu.CompilerParams(dimension_semantics=("parallel",)),
        cost_estimate=pl.CostEstimate(flops=flops, transcendentals=0,
                                      bytes_accessed=bytes_accessed),
    )(xe, skip_rows, packed["wu"], packed["m1"], packed["m2"], packed["bias"])

    out = out2d.reshape(N, HO, WO, Cout)
    return jnp.transpose(out, (0, 3, 1, 2))


def _reference(x_nchw, skip_nchw, wt, bt, w1, b1, w2, b2):
    """Pure-JAX f32 reference matching the PyTorch DecoderBlock semantics."""
    f32 = jnp.float32
    x = jnp.transpose(x_nchw, (0, 2, 3, 1)).astype(f32)
    skip = jnp.transpose(skip_nchw, (0, 2, 3, 1)).astype(f32)

    # ConvTranspose2d(kernel=2, stride=2): out[n, 2i+ky, 2j+kx, co]
    up = jnp.einsum('nhwi,iokl->nhkwlo', x, wt.astype(f32))
    N, H, _, W, _, Co = up.shape
    up = up.reshape(N, 2 * H, 2 * W, Co) + bt.astype(f32)

    cat = jnp.concatenate([up, skip], axis=-1)

    dn = ("NHWC", "HWIO", "NHWC")
    w1h = jnp.transpose(w1, (2, 3, 1, 0)).astype(f32)
    w2h = jnp.transpose(w2, (2, 3, 1, 0)).astype(f32)
    h = lax.conv_general_dilated(cat, w1h, (1, 1), "SAME", dimension_numbers=dn)
    h = jnp.maximum(h + b1.astype(f32), 0.0)
    h = lax.conv_general_dilated(h, w2h, (1, 1), "SAME", dimension_numbers=dn)
    h = jnp.maximum(h + b2.astype(f32), 0.0)
    return jnp.transpose(h, (0, 3, 1, 2))


if __name__ == "__main__":
    # DecoderBlock(in_channels=16, out_channels=8):
    #   x    : (N, 16,  8,  8)   decoder feature map
    #   skip : (N,  8, 16, 16)   encoder skip connection (concat -> 16 ch)
    N, Cin, Cout, H, W = 2, 16, 8, 8, 8
    HO, WO = 2 * H, 2 * W

    key = jax.random.PRNGKey(0)
    kx, ks, k1, k2, k3, k4, k5, k6 = jax.random.split(key, 8)

    x = jax.random.normal(kx, (N, Cin, H, W), dtype=jnp.float32)
    skip = jax.random.normal(ks, (N, Cout, HO, WO), dtype=jnp.float32)

    # PyTorch-layout parameters.
    wt = jax.random.normal(k1, (Cin, Cout, 2, 2), dtype=jnp.float32) * 0.1
    bt = jax.random.normal(k2, (Cout,), dtype=jnp.float32) * 0.1
    w1 = jax.random.normal(k3, (Cout, Cin, 3, 3), dtype=jnp.float32) * 0.1
    b1 = jax.random.normal(k4, (Cout,), dtype=jnp.float32) * 0.1
    w2 = jax.random.normal(k5, (Cout, Cout, 3, 3), dtype=jnp.float32) * 0.1
    b2 = jax.random.normal(k6, (Cout,), dtype=jnp.float32) * 0.1

    # One-time weight repacking (hoisted out of the per-call forward path).
    packed = pack_decoder_params(wt, bt, w1, b1, w2, b2, spatial=(H, W))
    packed = jax.tree_util.tree_map(jax.block_until_ready, packed)

    fwd = jax.jit(decoder_block)
    out = fwd(packed, x, skip)
    jax.block_until_ready(out)

    ref = _reference(x, skip, wt, bt, w1, b1, w2, b2)
    assert out.shape == (N, Cout, HO, WO)
    max_err = float(jnp.max(jnp.abs(out - ref)))
    # bf16 matmul operands (f32 accumulation) vs. an all-f32 reference:
    # expected deviation is O(1e-2) on O(1) outputs; a layout/shift bug would
    # show up as O(0.1..1) errors.
    assert jnp.allclose(out, ref, atol=5e-2, rtol=5e-2), max_err

    print("KERNEL_OK")
</pallas_src>

<mosaic_0001>
module attributes {stable_mosaic.version = 11 : i64} {
  func.func @kernel(%arg0: i32, %arg1: memref<16x128xbf16, #tpu.memory_space<vmem>>, %arg2: memref<16x128xbf16, #tpu.memory_space<vmem>>, %arg3: memref<128x256xbf16, #tpu.memory_space<vmem>>, %arg4: memref<768x128xbf16, #tpu.memory_space<vmem>>, %arg5: memref<384x128xbf16, #tpu.memory_space<vmem>>, %arg6: memref<3x1x128xf32, #tpu.memory_space<vmem>>, %arg7: memref<16x128xf32, #tpu.memory_space<vmem>>) attributes {dimension_semantics = [#tpu.dimension_semantics<parallel>], iteration_bounds = array<i64: 2>, scalar_prefetch = 0 : i64, scratch_operands = 0 : i64, tpu.core_type = #tpu.core_type<tc>, window_params = [{transform_indices = @transform_0, window_bounds = array<i64: 16, 128>}, {transform_indices = @transform_1, window_bounds = array<i64: 16, 128>}, {pipeline_mode = #tpu.pipeline_mode<synchronous>, transform_indices = @transform_2, window_bounds = array<i64: 128, 256>}, {pipeline_mode = #tpu.pipeline_mode<synchronous>, transform_indices = @transform_3, window_bounds = array<i64: 768, 128>}, {pipeline_mode = #tpu.pipeline_mode<synchronous>, transform_indices = @transform_4, window_bounds = array<i64: 384, 128>}, {pipeline_mode = #tpu.pipeline_mode<synchronous>, transform_indices = @transform_5, window_bounds = array<i64: 3, 1, 128>}, {transform_indices = @transform_6, window_bounds = array<i64: 16, 128>}]} {
    %0 = tpu.iota {dimensions = array<i32: 0>} : vector<16x1xi32>
    %c2_i32 = arith.constant 2 : i32
    %c0_i32 = arith.constant 0 : i32
    %1 = arith.cmpi eq, %c2_i32, %c0_i32 : i32
    %c1_i32 = arith.constant 1 : i32
    %2 = arith.select %1, %c1_i32, %c2_i32 : i32
    %3 = vector.broadcast %2 : i32 to vector<16x1xi32>
    %4 = arith.remsi %0, %3 : vector<16x1xi32>
    %c0_i32_0 = arith.constant 0 : i32
    %5 = vector.broadcast %c0_i32_0 : i32 to vector<16x1xi32>
    %6 = arith.cmpi ne, %4, %5 : vector<16x1xi32>
    %c0_i32_1 = arith.constant 0 : i32
    %7 = vector.broadcast %c0_i32_1 : i32 to vector<16x1xi32>
    %8 = arith.cmpi slt, %4, %7 : vector<16x1xi32>
    %c0_i32_2 = arith.constant 0 : i32
    %9 = arith.cmpi slt, %2, %c0_i32_2 : i32
    %10 = vector.broadcast %9 : i1 to vector<16x1xi1>
    %11 = vector.broadcast %10 : vector<16x1xi1> to vector<16x1xi1>
    %12 = arith.xori %8, %11 : vector<16x1xi1>
    %13 = arith.andi %12, %6 : vector<16x1xi1>
    %14 = vector.broadcast %2 : i32 to vector<16x1xi32>
    %15 = arith.addi %4, %14 : vector<16x1xi32>
    %16 = arith.select %13, %15, %4 : vector<16x1xi1>, vector<16x1xi32>
    %c0_i32_3 = arith.constant 0 : i32
    %17 = vector.broadcast %c0_i32_3 : i32 to vector<16x1xi32>
    %18 = arith.cmpi eq, %16, %17 : vector<16x1xi32>
    %c0_i32_4 = arith.constant 0 : i32
    %19 = vector.broadcast %c0_i32_4 : i32 to vector<16x1xi32>
    %20 = arith.cmpi eq, %0, %19 : vector<16x1xi32>
    %c15_i32 = arith.constant 15 : i32
    %21 = vector.broadcast %c15_i32 : i32 to vector<16x1xi32>
    %22 = arith.cmpi eq, %0, %21 : vector<16x1xi32>
    %c0 = arith.constant 0 : index
    %c0_5 = arith.constant 0 : index
    %23 = vector.load %arg1[%c0, %c0_5] : memref<16x128xbf16, #tpu.memory_space<vmem>>, vector<16x128xbf16>
    %c0_6 = arith.constant 0 : index
    %c0_7 = arith.constant 0 : index
    %24 = vector.load %arg3[%c0_6, %c0_7] : memref<128x256xbf16, #tpu.memory_space<vmem>>, vector<128x256xbf16>
    %cst = arith.constant dense<0.000000e+00> : vector<16x256xf32>
    %25 = tpu.matmul %23, %24, %cst {dimension_numbers = #tpu.dot_dimension_numbers<[1], [0], [0], [1], [0, 0, 1, 1], [], []>} : vector<16x128xbf16>, vector<128x256xbf16>, vector<16x256xf32> -> vector<16x256xf32>
    %26 = vector.extract_strided_slice %25 {offsets = [0, 0], sizes = [16, 128], strides = [1, 1]} : vector<16x256xf32> to vector<16x128xf32>
    %27 = vector.extract_strided_slice %25 {offsets = [0, 128], sizes = [16, 128], strides = [1, 1]} : vector<16x256xf32> to vector<16x128xf32>
    %28 = vector.shape_cast %18 : vector<16x1xi1> to vector<16x1xi1>
    %29 = vector.broadcast %28 : vector<16x1xi1> to vector<16x128xi1>
    %30 = arith.select %29, %26, %27 : vector<16x128xi1>, vector<16x128xf32>
    %c0_8 = arith.constant 0 : index
    %c0_9 = arith.constant 0 : index
    %c0_10 = arith.constant 0 : index
    %31 = vector.load %arg6[%c0_8, %c0_9, %c0_10] : memref<3x1x128xf32, #tpu.memory_space<vmem>>, vector<1x1x128xf32>
    %32 = vector.shape_cast %31 : vector<1x1x128xf32> to vector<1x128xf32>
    %33 = vector.broadcast %32 : vector<1x128xf32> to vector<16x128xf32>
    %34 = arith.addf %30, %33 : vector<16x128xf32>
    %c0_11 = arith.constant 0 : index
    %c0_12 = arith.constant 0 : index
    %35 = vector.load %arg2[%c0_11, %c0_12] : memref<16x128xbf16, #tpu.memory_space<vmem>>, vector<16x128xbf16>
    %36 = arith.extf %35 : vector<16x128xbf16> to vector<16x128xf32>
    %37 = tpu.concatenate %34, %36 in 1 : vector<16x128xf32>, vector<16x128xf32> -> vector<16x256xf32>
    %c1_i32_13 = arith.constant 1 : i32
    %38 = tpu.dynamic_rotate %37 by %c1_i32_13 dim 0 : vector<16x256xf32>, i32 -> vector<16x256xf32>
    %cst_14 = arith.constant 0.000000e+00 : f32
    %39 = vector.shape_cast %20 : vector<16x1xi1> to vector<16x1xi1>
    %40 = vector.broadcast %39 : vector<16x1xi1> to vector<16x256xi1>
    %41 = vector.broadcast %cst_14 : f32 to vector<16x256xf32>
    %42 = arith.select %40, %41, %38 : vector<16x256xi1>, vector<16x256xf32>
    %c15_i32_15 = arith.constant 15 : i32
    %43 = tpu.dynamic_rotate %37 by %c15_i32_15 dim 0 : vector<16x256xf32>, i32 -> vector<16x256xf32>
    %cst_16 = arith.constant 0.000000e+00 : f32
    %44 = vector.shape_cast %22 : vector<16x1xi1> to vector<16x1xi1>
    %45 = vector.broadcast %44 : vector<16x1xi1> to vector<16x256xi1>
    %46 = vector.broadcast %cst_16 : f32 to vector<16x256xf32>
    %47 = arith.select %45, %46, %43 : vector<16x256xi1>, vector<16x256xf32>
    %48 = tpu.concatenate %42, %37, %47 in 1 : vector<16x256xf32>, vector<16x256xf32>, vector<16x256xf32> -> vector<16x768xf32>
    %49 = arith.truncf %48 : vector<16x768xf32> to vector<16x768xbf16>
    %c0_17 = arith.constant 0 : index
    %c0_18 = arith.constant 0 : index
    %50 = vector.load %arg4[%c0_17, %c0_18] : memref<768x128xbf16, #tpu.memory_space<vmem>>, vector<768x128xbf16>
    %cst_19 = arith.constant dense<0.000000e+00> : vector<16x128xf32>
    %51 = tpu.matmul %49, %50, %cst_19 {dimension_numbers = #tpu.dot_dimension_numbers<[1], [0], [0], [1], [0, 0, 1, 1], [], []>} : vector<16x768xbf16>, vector<768x128xbf16>, vector<16x128xf32> -> vector<16x128xf32>
    %c1 = arith.constant 1 : index
    %c0_20 = arith.constant 0 : index
    %c0_21 = arith.constant 0 : index
    %52 = vector.load %arg6[%c1, %c0_20, %c0_21] : memref<3x1x128xf32, #tpu.memory_space<vmem>>, vector<1x1x128xf32>
    %53 = vector.shape_cast %52 : vector<1x1x128xf32> to vector<1x128xf32>
    %54 = vector.broadcast %53 : vector<1x128xf32> to vector<16x128xf32>
    %55 = arith.addf %51, %54 : vector<16x128xf32>
    %cst_22 = arith.constant 0.000000e+00 : f32
    %56 = vector.broadcast %cst_22 : f32 to vector<16x128xf32>
    %57 = arith.maximumf %55, %56 : vector<16x128xf32>
    %c1_i32_23 = arith.constant 1 : i32
    %58 = tpu.dynamic_rotate %57 by %c1_i32_23 dim 0 : vector<16x128xf32>, i32 -> vector<16x128xf32>
    %cst_24 = arith.constant 0.000000e+00 : f32
    %59 = vector.shape_cast %20 : vector<16x1xi1> to vector<16x1xi1>
    %60 = vector.broadcast %59 : vector<16x1xi1> to vector<16x128xi1>
    %61 = vector.broadcast %cst_24 : f32 to vector<16x128xf32>
    %62 = arith.select %60, %61, %58 : vector<16x128xi1>, vector<16x128xf32>
    %c15_i32_25 = arith.constant 15 : i32
    %63 = tpu.dynamic_rotate %57 by %c15_i32_25 dim 0 : vector<16x128xf32>, i32 -> vector<16x128xf32>
    %cst_26 = arith.constant 0.000000e+00 : f32
    %64 = vector.shape_cast %22 : vector<16x1xi1> to vector<16x1xi1>
    %65 = vector.broadcast %64 : vector<16x1xi1> to vector<16x128xi1>
    %66 = vector.broadcast %cst_26 : f32 to vector<16x128xf32>
    %67 = arith.select %65, %66, %63 : vector<16x128xi1>, vector<16x128xf32>
    %68 = tpu.concatenate %62, %57, %67 in 1 : vector<16x128xf32>, vector<16x128xf32>, vector<16x128xf32> -> vector<16x384xf32>
    %69 = arith.truncf %68 : vector<16x384xf32> to vector<16x384xbf16>
    %c0_27 = arith.constant 0 : index
    %c0_28 = arith.constant 0 : index
    %70 = vector.load %arg5[%c0_27, %c0_28] : memref<384x128xbf16, #tpu.memory_space<vmem>>, vector<384x128xbf16>
    %cst_29 = arith.constant dense<0.000000e+00> : vector<16x128xf32>
    %71 = tpu.matmul %69, %70, %cst_29 {dimension_numbers = #tpu.dot_dimension_numbers<[1], [0], [0], [1], [0, 0, 1, 1], [], []>} : vector<16x384xbf16>, vector<384x128xbf16>, vector<16x128xf32> -> vector<16x128xf32>
    %c2 = arith.constant 2 : index
    %c0_30 = arith.constant 0 : index
    %c0_31 = arith.constant 0 : index
    %72 = vector.load %arg6[%c2, %c0_30, %c0_31] : memref<3x1x128xf32, #tpu.memory_space<vmem>>, vector<1x1x128xf32>
    %73 = vector.shape_cast %72 : vector<1x1x128xf32> to vector<1x128xf32>
    %74 = vector.broadcast %73 : vector<1x128xf32> to vector<16x128xf32>
    %75 = arith.addf %71, %74 : vector<16x128xf32>
    %cst_32 = arith.constant 0.000000e+00 : f32
    %76 = vector.broadcast %cst_32 : f32 to vector<16x128xf32>
    %77 = arith.maximumf %75, %76 : vector<16x128xf32>
    %c0_33 = arith.constant 0 : index
    %c0_34 = arith.constant 0 : index
    %78 = vector.load %arg7[%c0_33, %c0_34] : memref<16x128xf32, #tpu.memory_space<vmem>>, vector<16x128xf32>
    tpu.vector_store %arg7[%c0_33, %c0_34], %77 {strides = array<i32>} : memref<16x128xf32, #tpu.memory_space<vmem>>, vector<16x128xf32>,
    return
  }
  func.func @transform_0(%arg0: i32) -> (i32, i32) {
    %c0_i32 = arith.constant 0 : i32
    %c0_i32_0 = arith.constant 0 : i32
    return %arg0, %c0_i32 : i32, i32
  }
  func.func @transform_1(%arg0: i32) -> (i32, i32) {
    %c0_i32 = arith.constant 0 : i32
    %c0_i32_0 = arith.constant 0 : i32
    return %arg0, %c0_i32 : i32, i32
  }
  func.func @transform_2(%arg0: i32) -> (i32, i32) {
    %c0_i32 = arith.constant 0 : i32
    %c0_i32_0 = arith.constant 0 : i32
    %c0_i32_1 = arith.constant 0 : i32
    return %c0_i32, %c0_i32_0 : i32, i32
  }
  func.func @transform_3(%arg0: i32) -> (i32, i32) {
    %c0_i32 = arith.constant 0 : i32
    %c0_i32_0 = arith.constant 0 : i32
    %c0_i32_1 = arith.constant 0 : i32
    return %c0_i32, %c0_i32_0 : i32, i32
  }
  func.func @transform_4(%arg0: i32) -> (i32, i32) {
    %c0_i32 = arith.constant 0 : i32
    %c0_i32_0 = arith.constant 0 : i32
    %c0_i32_1 = arith.constant 0 : i32
    return %c0_i32, %c0_i32_0 : i32, i32
  }
  func.func @transform_5(%arg0: i32) -> (i32, i32, i32) {
    %c0_i32 = arith.constant 0 : i32
    %c0_i32_0 = arith.constant 0 : i32
    %c0_i32_1 = arith.constant 0 : i32
    %c0_i32_2 = arith.constant 0 : i32
    return %c0_i32, %c0_i32_0, %c0_i32_1 : i32, i32, i32
  }
  func.func @transform_6(%arg0: i32) -> (i32, i32) {
    %c0_i32 = arith.constant 0 : i32
    %c0_i32_0 = arith.constant 0 : i32
    return %arg0, %c0_i32 : i32, i32
  }
}

</mosaic_0001>

<bundles_post_ra>
// kernel: decoder_block.1
= control target key start
LH: loop header
LB: loop body
LE: loop exit
PB: predicated region body
PF: predicated region fallthrough
CT: control target
= control target key end

     0   :  { %s1812_s21 = smov 0   ;;  %s2167_s0 = inlined_call_operand.vmem [shape: bf16[32,128], index: 0, kind: input, shape index: {}]   ;;  %s2168_s1 = inlined_call_operand.vmem [shape: bf16[32,128], index: 1, kind: input, shape index: {}]   ;;  %s2169_s2 = inlined_call_operand.vmem [shape: bf16[128,256], index: 2, kind: input, shape index: {}]   ;;  %s2170_s3 = inlined_call_operand.vmem [shape: bf16[768,128], index: 3, kind: input, shape index: {}]   ;;  %s2171_s4 = inlined_call_operand.vmem [shape: bf16[384,128], index: 4, kind: input, shape index: {}]   ;;  %s2172_s5 = inlined_call_operand.vmem [shape: f32[3,1,128], index: 5, kind: input, shape index: {}]   ;;  %s2173_s6 = inlined_call_operand.vmem [shape: f32[32,128], index: 6, kind: output, shape index: {}]  }
   0x1 LB: > { %s1403_s22 = sadd.s32 4294967295, %s1771_s21   ;;  %p1407_p0 = scmp.ge.s32.totalorder %s1771_s21, 1  ;;  %s1771_s21 = sphi %s1812_s21, %s16_s21  }
   0x2   : > { %p224_p1 = scmp.lt.s32.totalorder %s1771_s21, 3 }
   0x4   : > { %p225_p2 = pnand %p1407_p0, %p224_p1 }
   0x5   : > { %v1666_v0 = vld [vmem:[%s2169_s2 + $0x4] ss:$8 sps:$4 sm:$0xff] (!%p225_p2)   ;;  %s1408_s25 = sshll.u32 (!%p225_p2), %s1403_s22, 1  ;;  %v1668_v1 = vld [vmem:[%s2169_s2] ss:$8 sps:$4 sm:$0xff] (!%p225_p2)   ;;  %v1773_v2 = vmov (!%p225_p2), 0   ;;  %v278_v44 = vlaneseq (!%p225_p2) }
   0x6   : > { %228 = sbr.rel (%p225_p2) target bundleno = 743 (0x2e7), region = 44  ;;  %447 = vmatprep.mubr.bf16.mxu0 (!%p225_p2), %v1773_v2  ;;  %p260_p3 = scmp.lt.s32.totalorder (!%p225_p2), %s1408_s25, 3  ;;  %415 = vmatprep.subr.bf16.mxu0 (!%p225_p2), %v1666_v0  ;;  %v1669_v3 = vld [vmem:[%s2169_s2 + $0x14] ss:$8 sps:$4 sm:$0xff] (!%p225_p2)   ;;  %v1671_v4 = vld [vmem:[%s2169_s2 + $0x10] ss:$8 sps:$4 sm:$0xff] (!%p225_p2)  }
   0x7   : > { %416 = vmatpush1.bf16.msra.mxu0 (!%p225_p2), %v1668_v1  ;;  %v1672_v5 = vld [vmem:[%s2169_s2 + $0x24] ss:$8 sps:$4 sm:$0xff] (!%p225_p2)   ;;  %v1674_v6 = vld [vmem:[%s2169_s2 + $0x20] ss:$8 sps:$4 sm:$0xff] (!%p225_p2)   ;;  %v1675_v7 = vld [vmem:[%s2169_s2 + $0x34] ss:$8 sps:$4 sm:$0xff] (!%p225_p2)  }
   0x8   : > { %417 = vmatprep.subr.bf16.mxu0 (!%p225_p2), %v1669_v3  ;;  %v1677_v8 = vld [vmem:[%s2169_s2 + $0x30] ss:$8 sps:$4 sm:$0xff] (!%p225_p2)   ;;  %v1678_v9 = vld [vmem:[%s2169_s2 + $0x44] ss:$8 sps:$4 sm:$0xff] (!%p225_p2)   ;;  %v1680_v10 = vld [vmem:[%s2169_s2 + $0x40] ss:$8 sps:$4 sm:$0xff] (!%p225_p2)  }
   0x9   : > { %v1693_v11 = vld [vmem:[%s2170_s3 + $0x40] sm:$0xff] (!%p225_p2)   ;;  %v1681_v13 = vld [vmem:[%s2169_s2 + $0x54] ss:$8 sps:$4 sm:$0xff] (!%p225_p2)   ;;  %v1683_v14 = vld [vmem:[%s2169_s2 + $0x50] ss:$8 sps:$4 sm:$0xff] (!%p225_p2)   ;;  %v1974_v52 = vshrl.u32 (!%p225_p2), %v278_v44, 7 }
   0xa   : > { %v1694_v12 = vld [vmem:[%s2170_s3] sm:$0xff] (!%p225_p2)   ;;  %1537 = vmatprep.subr.bf16.mxu1 (!%p225_p2), %v1693_v11  ;;  %v1697_v15 = vld [vmem:[%s2170_s3 + $0x48] sm:$0xff] (!%p225_p2)   ;;  %v1701_v19 = vld [vmem:[%s2170_s3 + $0x50] sm:$0xff] (!%p225_p2)   ;;  %vm1774_vm2 = vmmov (!%p225_p2), 1   ;;  %vm1776_vm9 = vmmov (!%p225_p2), 0  }
   0xb   : > { %418 = vmatpush1.bf16.msra.mxu0 (!%p225_p2), %v1671_v4  ;;  %1538 = vmatpush3.bf16.msra.mxu1 (!%p225_p2), %v1694_v12  ;;  %v1698_v16 = vld [vmem:[%s2170_s3 + $0x8] sm:$0xff] (!%p225_p2)   ;;  %v1702_v20 = vld [vmem:[%s2170_s3 + $0x10] sm:$0xff] (!%p225_p2)   ;;  %v1705_v23 = vld [vmem:[%s2170_s3 + $0x58] sm:$0xff] (!%p225_p2)   ;;  %vm481_vm0 = vcmp.lt.s32.totalorder (!%p225_p2), %v1974_v52, 1  ;;  %vm1535_vm1 = vcmp.ne.s32.totalorder (!%p225_p2), %v1974_v52, 0  ;;  %v280_v0 = vadd.s32 (!%p225_p2), 8, %v1974_v52 }
   0xc   : > { %419 = vmatprep.subr.bf16.mxu0 (!%p225_p2), %v1672_v5  ;;  %v1684_v17 = vld [vmem:[%s2169_s2 + $0x64] ss:$8 sps:$4 sm:$0xff] (!%p225_p2)   ;;  %1539 = vmatprep.subr.bf16.mxu1 (!%p225_p2), %v1697_v15  ;;  %v1686_v18 = vld [vmem:[%s2169_s2 + $0x60] ss:$8 sps:$4 sm:$0xff] (!%p225_p2)   ;;  %v1687_v21 = vld [vmem:[%s2169_s2 + $0x74] ss:$8 sps:$4 sm:$0xff] (!%p225_p2)  }
   0xd   : > { %s2179_s25 = smov (!%p260_p3, %s1408_s25), 3  ;;  %v1689_v22 = vld [vmem:[%s2169_s2 + $0x70] ss:$8 sps:$4 sm:$0xff]   ;;  %v1691_v26 = vld [vmem:[%s2170_s3 + $0xc0] sm:$0xff]   ;;  %v1695_v30 = vld [vmem:[%s2170_s3 + $0xc8] sm:$0xff]   ;;  %vm498_vm4 = vcmp.lt.s32.totalorder %v1974_v52, 7 }
   0xe   : > { %s1409_s10 = sshll.u32 %s2179_s25, 2  ;;  %v1706_v24 = vld [vmem:[%s2170_s3 + $0x18] sm:$0xff]   ;;  %v1692_v27 = vld [vmem:[%s2170_s3 + $0x80] sm:$0xff]   ;;  %v1696_v31 = vld [vmem:[%s2170_s3 + $0x88] sm:$0xff]   ;;  %vm1536_vm5 = vcmp.ne.s32.totalorder %v280_v0, 15  ;;  %v285_v5 = vand.u32 1, %v1974_v52 }
   0xf   : > { %s1849_s17 = scalar_lea.vmem %s2167_s0, %s1409_s10  ;;  %420 = vmatpush1.bf16.msra.mxu0 %v1674_v6  ;;  %1540 = vmatpush3.bf16.msra.mxu1 %v1698_v16  ;;  %v1709_v28 = vld [vmem:[%s2170_s3 + $0x60] sm:$0xff]   ;;  %v1699_v32 = vld [vmem:[%s2170_s3 + $0xd0] sm:$0xff]   ;;  %v1713_v33 = vld [vmem:[%s2170_s3 + $0x68] sm:$0xff]   ;;  %s269_s11 = scalar_lea.vmem %s2168_s1, %s1409_s10  ;;  %v292_v6 = vand.u32 1, %v280_v0 }
  0x10   : > { %421 = vmatprep.subr.bf16.mxu0 %v1675_v7  ;;  %1541 = vmatprep.subr.bf16.mxu1 %v1701_v19  ;;  %v1690_v25 = vld [vmem:[%s1849_s17] sm:$0xff]   ;;  %v1700_v34 = vld [vmem:[%s2170_s3 + $0x90] sm:$0xff]   ;;  %v1703_v35 = vld [vmem:[%s2170_s3 + $0xd8] sm:$0xff]   ;;  %vm305_vm7 = vcmp.eq.s32.totalorder %v285_v5, 0  ;;  %s1413_s10 = sshll.u32 %s2179_s25, 3 }
  0x11   : > { %v1710_v29 = vld [vmem:[%s2170_s3 + $0x20] sm:$0xff]   ;;  %v1704_v36 = vld [vmem:[%s2170_s3 + $0x98] sm:$0xff]   ;;  %v1711_v39 = vld [vmem:[%s2170_s3 + $0xe8] sm:$0xff]   ;;  %vm306_vm8 = vcmp.eq.s32.totalorder %v292_v6, 0  ;;  %s275_s20 = scalar_lea.vmem %s2173_s6, %s1413_s10 }
  0x12   : > { %v1707_v37 = vld [vmem:[%s2170_s3 + $0xe0] sm:$0xff]   ;;  %v1712_v40 = vld [vmem:[%s2170_s3 + $0xa8] sm:$0xff]   ;;  %v1715_v42 = vld [vmem:[%s2170_s3 + $0xf0] sm:$0xff]  }
  0x13   : > { %422 = vmatpush1.bf16.msra.mxu0 %v1677_v8  ;;  %1542 = vmatpush3.bf16.msra.mxu1 %v1702_v20  ;;  %v1708_v38 = vld [vmem:[%s2170_s3 + $0xa0] sm:$0xff]   ;;  %v1714_v41 = vld [vmem:[%s2170_s3 + $0x28] sm:$0xff]   ;;  %v1716_v43 = vld [vmem:[%s2170_s3 + $0xb0] sm:$0xff]  }
  0x14   : > { %423 = vmatprep.subr.bf16.mxu0 %v1678_v9  ;;  %1543 = vmatprep.subr.bf16.mxu1 %v1705_v23  ;;  %v1717_v45 = vld [vmem:[%s2170_s3 + $0x70] sm:$0xff]   ;;  %v1719_v47 = vld [vmem:[%s2170_s3 + $0xf8] sm:$0xff]   ;;  %v473_v48 = vld [vmem:[%s269_s11] sm:$0xff]  }
  0x15   : > { %v1718_v46 = vld [vmem:[%s2170_s3 + $0x30] sm:$0xff]   ;;  %v1720_v49 = vld [vmem:[%s2170_s3 + $0xb8] sm:$0xff]   ;;  %v475_v50 = vunpack.c.l.bf16 %v473_v48  ;;  %v476_v51 = vunpack.c.h.bf16 %v473_v48  ;;  %v1724_v59 = vld [vmem:[%s2170_s3 + $0x140] sm:$0xff]  }
  0x16   : > { %v1721_v53 = vld [vmem:[%s2170_s3 + $0x78] sm:$0xff]   ;;  %vm1991_vm3 = vmpackc.low %vm1774_vm2, %vm1535_vm1  ;;  %v1431_v8 = vld [vmem:[%s2172_s5] ss:$0 sm:$0xff] }
  0x17   : > { %424 = vmatpush1.bf16.msra.mxu0 %v1680_v10  ;;  %1544 = vmatpush3.bf16.msra.mxu1 %v1706_v24  ;;  %v1722_v54 = vld [vmem:[%s2170_s3 + $0x38] sm:$0xff]   ;;  %v478_v55 = vrot.slane %v475_v50, 7  ;;  %v480_v56 = vrot.slane %v476_v51, 7  ;;  %v495_v62 = vrot.slane %v475_v50, 1  ;;  %v497_v63 = vrot.slane %v476_v51, 1  ;;  %vm2003_vm6 = vmpackc.low %vm1536_vm5, %vm1774_vm2  ;;  %v1742_v44 = vld [vmem:[%s2171_s4 + $0x80] sm:$0xff]  }
  0x18   : > { %425 = vmatprep.subr.bf16.mxu0 %v1681_v13  ;;  %1545 = vmatprep.subr.bf16.mxu1 %v1709_v28  ;;  %v1748_v50 = vld [vmem:[%s2171_s4 + $0x90] sm:$0xff]   ;;  %v1763_v5 = vld [vmem:[%s2171_s4 + $0xb8] sm:$0xff]  }
  0x19   : > { %v483_v57 = vsel %vm481_vm0, %v478_v55, %v480_v56  ;;  %v485_v58 = vsel %vm481_vm0, %v480_v56, %v478_v55  ;;  %v500_v1 = vsel %vm498_vm4, %v495_v62, %v497_v63  ;;  %v502_v2 = vsel %vm498_vm4, %v497_v63, %v495_v62  ;;  %v1747_v51 = vld [vmem:[%s2171_s4 + $0x10] sm:$0xff]   ;;  %v1750_v55 = vld [vmem:[%s2171_s4 + $0x18] sm:$0xff]   ;;  %v1752_v56 = vld [vmem:[%s2171_s4 + $0x60] sm:$0xff]  }
  0x1a   : > { %v1485_v61 = vpack.c.bf16 %v483_v57, %v485_v58  ;;  %v1493_v3 = vpack.c.bf16 %v502_v2, %v500_v1  ;;  %v1753_v57 = vld [vmem:[%s2171_s4 + $0x20] sm:$0xff]   ;;  %v1757_v62 = vld [vmem:[%s2171_s4 + $0xa8] sm:$0xff]   ;;  %v1758_v63 = vld [vmem:[%s2171_s4 + $0x70] sm:$0xff]  }
  0x1b   : > { %426 = vmatpush1.bf16.msra.mxu0 %v1683_v14  ;;  %1546 = vmatpush3.bf16.msra.mxu1 %v1710_v29  ;;  %v1727_v29 = vld [vmem:[%s2170_s3 + $0x108] sm:$0xff]   ;;  %v1754_v58 = vld [vmem:[%s2171_s4 + $0xa0] sm:$0xff]   ;;  %v1759_v0 = vld [vmem:[%s2171_s4 + $0x30] sm:$0xff]  }
  0x1c   : > { %427 = vmatprep.subr.bf16.mxu0 %v1684_v17  ;;  %1547 = vmatprep.subr.bf16.mxu1 %v1713_v33  ;;  %v1731_v33 = vld [vmem:[%s2170_s3 + $0x118] sm:$0xff]   ;;  %v1760_v1 = vld [vmem:[%s2171_s4 + $0xb0] sm:$0xff]  }
  0x1d   : > { %1486 = vmatprep.mubr.msk.bf16.mxu1 %vm1991_vm3, %v1485_v61  ;;  %v1756_v61 = vld [vmem:[%s2171_s4 + $0x28] sm:$0xff]   ;;  %v1761_v2 = vld [vmem:[%s2171_s4 + $0x78] sm:$0xff]  }
  0x1f   : > { %428 = vmatpush1.bf16.msra.mxu0 %v1686_v18  ;;  %1548 = vmatpush3.bf16.msra.mxu1 %v1714_v41  ;;  %v1739_v41 = vld [vmem:[%s2170_s3 + $0x138] sm:$0xff]  }
  0x20   : > { %429 = vmatprep.subr.bf16.mxu0 %v1687_v21  ;;  %1549 = vmatprep.subr.bf16.mxu1 %v1717_v45  ;;  %v1775_v45 = vmov 0.0  }
  0x23   : > { %430 = vmatpush1.bf16.msra.mxu0 %v1689_v22  ;;  %1550 = vmatpush3.bf16.msra.mxu1 %v1718_v46  ;;  %v1743_v46 = vld [vmem:[%s2171_s4 + $0x48] sm:$0xff]  }
  0x24   : > { %1559 = vmatprep.subr.bf16.mxu0 %v1691_v26  ;;  %1551 = vmatprep.subr.bf16.mxu1 %v1721_v53  ;;  %v1749_v53 = vld [vmem:[%s2171_s4 + $0x58] sm:$0xff]  }
  0x26   : > { %448 = vmatmul.mubr.bf16.vlgmr.msra.gmra.mrb[0].mxu0 %v1690_v25  ;;  %v1725_v25 = vld [vmem:[%s2170_s3 + $0x100] sm:$0xff]  }
  0x27   : > { %1560 = vmatpush3.bf16.msra.mxu0 %v1692_v27  ;;  %1552 = vmatpush3.bf16.msra.mxu1 %v1722_v54  ;;  %v1726_v27 = vld [vmem:[%s2170_s3 + $0x148] sm:$0xff]   ;;  %v1751_v54 = vld [vmem:[%s2171_s4 + $0x98] sm:$0xff]  }
  0x28   : > { %1561 = vmatprep.subr.bf16.mxu0 %v1695_v30  ;;  %982 = vmatprep.mubr.bf16.mxu0 %v473_v48  ;;  %v1728_v30 = vld [vmem:[%s2170_s3 + $0x150] sm:$0xff]   ;;  %v1744_v48 = vld [vmem:[%s2171_s4 + $0x8] sm:$0xff]  }
  0x29   : > { %1581 = vmatprep.subr.bf16.mxu1 %v1724_v59  ;;  %v1755_v59 = vld [vmem:[%s2171_s4 + $0x68] sm:$0xff]  }
  0x2b   : > { %1562 = vmatpush3.bf16.msra.mxu0 %v1696_v31  ;;  %v1729_v31 = vld [vmem:[%s2170_s3 + $0x110] sm:$0xff]  }
  0x2c   : > { %1563 = vmatprep.subr.bf16.mxu0 %v1699_v32  ;;  %v1730_v32 = vld [vmem:[%s2170_s3 + $0x158] sm:$0xff]  }
  0x2f   : > { %1564 = vmatpush3.bf16.msra.mxu0 %v1700_v34  ;;  %v1732_v34 = vld [vmem:[%s2170_s3 + $0x160] sm:$0xff]  }
  0x30   : > { %1565 = vmatprep.subr.bf16.mxu0 %v1703_v35  ;;  %v1733_v35 = vld [vmem:[%s2170_s3 + $0x120] sm:$0xff]  }
  0x33   : > { %1566 = vmatpush3.bf16.msra.mxu0 %v1704_v36  ;;  %v1734_v36 = vld [vmem:[%s2170_s3 + $0x168] sm:$0xff]  }
  0x34   : > { %1567 = vmatprep.subr.bf16.mxu0 %v1707_v37  ;;  %v1735_v37 = vld [vmem:[%s2170_s3 + $0x128] sm:$0xff]  }
  0x37   : > { %1568 = vmatpush3.bf16.msra.mxu0 %v1708_v38  ;;  %v1736_v38 = vld [vmem:[%s2170_s3 + $0x170] sm:$0xff]  }
  0x38   : > { %1569 = vmatprep.subr.bf16.mxu0 %v1711_v39  ;;  %v1737_v39 = vld [vmem:[%s2170_s3 + $0x130] sm:$0xff]  }
  0x3b   : > { %1570 = vmatpush3.bf16.msra.mxu0 %v1712_v40  ;;  %v1738_v40 = vld [vmem:[%s2170_s3 + $0x178] sm:$0xff]  }
  0x3c   : > { %1571 = vmatprep.subr.bf16.mxu0 %v1715_v42  ;;  %v1740_v42 = vld [vmem:[%s2171_s4 + $0x40] sm:$0xff]  }
  0x3f   : > { %1572 = vmatpush3.bf16.msra.mxu0 %v1716_v43  ;;  %v1741_v43 = vld [vmem:[%s2171_s4] sm:$0xff]  }
  0x40   : > { %1573 = vmatprep.subr.bf16.mxu0 %v1719_v47  ;;  %v1745_v47 = vld [vmem:[%s2171_s4 + $0x88] sm:$0xff]  }
  0x43   : > { %1574 = vmatpush3.bf16.msra.mxu0 %v1720_v49  ;;  %v1746_v49 = vld [vmem:[%s2171_s4 + $0x50] sm:$0xff]  }
  0x44   : > { %1603 = vmatprep.subr.bf16.mxu0 %v1740_v42 }
  0xf9   : > { %v449_v7 = vpop.f32.mrb[0].mxu0 }
  0xfa   : > { %v451_v9 = vpop.f32.mrb[1].mxu0 }
  0xfb   : > { %v462_v10 = vsel %vm305_vm7, %v449_v7, %v451_v9  ;;  %v453_v11 = vpop.f32.mrb[2].mxu0 }
  0xfc   : > { %v471_v12 = vadd.f32 %v1431_v8, %v462_v10  ;;  %v455_v13 = vpop.f32.mrb[3].mxu0 }
  0xfd   : > { %v463_v14 = vsel %vm306_vm8, %v453_v11, %v455_v13  ;;  %v1434_v13 = vld [vmem:[%s2172_s5 + $0x1] ss:$0 sm:$0xff] }
  0xfe   : > { %v472_v15 = vadd.f32 %v1431_v8, %v463_v14  ;;  %v477_v16 = vrot.slane %v471_v12, 7  ;;  %v494_v17 = vrot.slane %v471_v12, 1 }
 0x100   : > { %v479_v18 = vrot.slane %v472_v15, 7  ;;  %v496_v19 = vrot.slane %v472_v15, 1  ;;  %v513_v20 = vpack.c.bf16 %v472_v15, %v471_v12 }
 0x102   : > { %v499_v21 = vsel %vm498_vm4, %v494_v17, %v496_v19  ;;  %v501_v22 = vsel %vm498_vm4, %v496_v19, %v494_v17  ;;  %983 = vmatmul.mubr.bf16.vlgmr.msra.gmra.mrb[4].mxu0 %v513_v20  ;;  %v482_v23 = vsel %vm481_vm0, %v477_v16, %v479_v18  ;;  %v484_v24 = vsel %vm481_vm0, %v479_v18, %v477_v16 }
 0x103   : > { %v1489_v26 = vpack.c.bf16 %v482_v23, %v484_v24  ;;  %v1497_v28 = vpack.c.bf16 %v501_v22, %v499_v21  ;;  %1604 = vmatpush3.bf16.msra.mxu0 %v1741_v43 }
 0x104   : > { %1605 = vmatprep.subr.bf16.mxu0 %v1743_v46  ;;  %v1500_v46 = vld [vmem:[%s2172_s5 + $0x2] ss:$0 sm:$0xff] }
 0x105   : > { %1490 = vmatmul.mubr.msk.bf16.vlgmr.msra.gmra.mrb[0].mxu1 %vm1991_vm3, %v1489_v26 }
 0x106   : > { %1582 = vmatpush3.bf16.msra.mxu1 %v1725_v25  ;;  %1494 = vmatprep.mubr.msk.bf16.mxu1 %vm2003_vm6, %v1493_v3  ;;  %v1762_v3 = vld [vmem:[%s2171_s4 + $0x38] sm:$0xff]  }
 0x107   : > { %1583 = vmatprep.subr.bf16.mxu1 %v1726_v27  ;;  %1606 = vmatpush3.bf16.msra.mxu0 %v1744_v48 }
 0x108   : > { %1607 = vmatprep.subr.bf16.mxu0 %v1746_v49 }
 0x10a   : > { %1584 = vmatpush3.bf16.msra.mxu1 %v1727_v29 }
 0x10b   : > { %1585 = vmatprep.subr.bf16.mxu1 %v1728_v30  ;;  %1608 = vmatpush3.bf16.msra.mxu0 %v1747_v51 }
 0x10c   : > { %1609 = vmatprep.subr.bf16.mxu0 %v1749_v53 }
 0x10e   : > { %1586 = vmatpush3.bf16.msra.mxu1 %v1729_v31 }
 0x10f   : > { %1587 = vmatprep.subr.bf16.mxu1 %v1730_v32  ;;  %1610 = vmatpush3.bf16.msra.mxu0 %v1750_v55 }
 0x110   : > { %1611 = vmatprep.subr.bf16.mxu0 %v1752_v56 }
 0x112   : > { %1588 = vmatpush3.bf16.msra.mxu1 %v1731_v33 }
 0x113   : > { %1589 = vmatprep.subr.bf16.mxu1 %v1732_v34  ;;  %1612 = vmatpush3.bf16.msra.mxu0 %v1753_v57 }
 0x114   : > { %1613 = vmatprep.subr.bf16.mxu0 %v1755_v59 }
 0x116   : > { %1590 = vmatpush3.bf16.msra.mxu1 %v1733_v35 }
 0x117   : > { %1591 = vmatprep.subr.bf16.mxu1 %v1734_v36  ;;  %1614 = vmatpush3.bf16.msra.mxu0 %v1756_v61 }
 0x118   : > { %1615 = vmatprep.subr.bf16.mxu0 %v1758_v63 }
 0x11a   : > { %1592 = vmatpush3.bf16.msra.mxu1 %v1735_v37 }
 0x11b   : > { %1593 = vmatprep.subr.bf16.mxu1 %v1736_v38  ;;  %1616 = vmatpush3.bf16.msra.mxu0 %v1759_v0 }
 0x11c   : > { %1617 = vmatprep.subr.bf16.mxu0 %v1761_v2 }
 0x11e   : > { %1594 = vmatpush3.bf16.msra.mxu1 %v1737_v39 }
 0x11f   : > { %1595 = vmatprep.subr.bf16.mxu1 %v1738_v40  ;;  %1618 = vmatpush3.bf16.msra.mxu0 %v1762_v3 }
 0x122   : > { %1596 = vmatpush3.bf16.msra.mxu1 %v1739_v41 }
 0x123   : > { %1634 = vmatprep.subr.bf16.mxu1 %v1775_v45 }
 0x125   : > { %1498 = vmatmul.mubr.msk.bf16.vlgmr.msra.gmra.mrb[4].mxu1 %vm2003_vm6, %v1497_v28 }
 0x126   : > { %1635 = vmatpush3.bf16.msra.mxu1 %v1742_v44  ;;  %1650 = vmatprep.mubr.msk.bf16.mxu1 %vm1776_vm9, %v1775_v45 }
 0x127   : > { %1636 = vmatprep.subr.bf16.mxu1 %v1775_v45 }
 0x12a   : > { %1637 = vmatpush3.bf16.msra.mxu1 %v1745_v47 }
 0x12b   : > { %1638 = vmatprep.subr.bf16.mxu1 %v1775_v45 }
 0x12e   : > { %1639 = vmatpush3.bf16.msra.mxu1 %v1748_v50 }
 0x12f   : > { %1640 = vmatprep.subr.bf16.mxu1 %v1775_v45 }
 0x132   : > { %1641 = vmatpush3.bf16.msra.mxu1 %v1751_v54 }
 0x133   : > { %1642 = vmatprep.subr.bf16.mxu1 %v1775_v45 }
 0x136   : > { %1643 = vmatpush3.bf16.msra.mxu1 %v1754_v58 }
 0x137   : > { %1644 = vmatprep.subr.bf16.mxu1 %v1775_v45 }
 0x13a   : > { %1645 = vmatpush3.bf16.msra.mxu1 %v1757_v62 }
 0x13b   : > { %1646 = vmatprep.subr.bf16.mxu1 %v1775_v45 }
 0x13e   : > { %1647 = vmatpush3.bf16.msra.mxu1 %v1760_v1 }
 0x13f   : > { %1648 = vmatprep.subr.bf16.mxu1 %v1775_v45 }
 0x142   : > { %1649 = vmatpush3.bf16.msra.mxu1 %v1763_v5 }
 0x1d5   : > { %v1575_v6 = vpop.f32.mrb[4].mxu0 }
 0x1d6   : > { %v1576_v7 = vpop.f32.mrb[5].mxu0 }
 0x1d7   : > { %v1577_v8 = vadd.f32 %v1576_v7, %v1575_v6  ;;  %v1578_v9 = vpop.f32.mrb[6].mxu0 }
 0x1d8   : > { %v1553_v10 = vpop.f32.mrb[0].mxu1  ;;  %v1579_v11 = vpop.f32.mrb[7].mxu0 }
 0x1d9   : > { %v1580_v12 = vadd.f32 %v1579_v11, %v1578_v9  ;;  %v1554_v14 = vpop.f32.mrb[1].mxu1 }
 0x1da   : > { %v1555_v15 = vadd.f32 %v1554_v14, %v1553_v10  ;;  %v1556_v16 = vpop.f32.mrb[2].mxu1 }
 0x1db   : > { %v1557_v17 = vpop.f32.mrb[3].mxu1 }
 0x1dc   : > { %v944_v18 = vadd.f32 %v1555_v15, %v1434_v13  ;;  %v1558_v19 = vadd.f32 %v1557_v17, %v1556_v16 }
 0x1de   : > { %v947_v20 = vadd.f32 %v1558_v19, %v1434_v13  ;;  %v985_v21 = vadd.f32 %v1577_v8, %v944_v18 }
 0x1e0   : > { %v988_v22 = vadd.f32 %v1580_v12, %v947_v20 }
 0x1f8   : > { %v1597_v23 = vpop.f32.mrb[4].mxu1 }
 0x1f9   : > { %v1598_v24 = vpop.f32.mrb[5].mxu1 }
 0x1fa   : > { %v1599_v25 = vadd.f32 %v1598_v24, %v1597_v23  ;;  %v1600_v26 = vpop.f32.mrb[6].mxu1 }
 0x1fb   : > { %v1601_v27 = vpop.f32.mrb[7].mxu1 }
 0x1fc   : > { %v1026_v28 = vadd.f32 %v1599_v25, %v985_v21  ;;  %v1602_v29 = vadd.f32 %v1601_v27, %v1600_v26 }
 0x1fe   : > { %v1032_v30 = vmax.f32 %v1026_v28, 0.0  ;;  %v1029_v31 = vadd.f32 %v1602_v29, %v988_v22 }
 0x200   : > { %v1033_v32 = vmax.f32 %v1029_v31, 0.0  ;;  %v1034_v33 = vrot.slane %v1032_v30, 7  ;;  %v1040_v34 = vrot.slane %v1032_v30, 1 }
 0x202   : > { %v1035_v35 = vrot.slane %v1033_v32, 7  ;;  %v1041_v36 = vrot.slane %v1033_v32, 1  ;;  %v1047_v37 = vpack.c.bf16 %v1033_v32, %v1032_v30 }
 0x204   : > { %v1036_v38 = vsel %vm481_vm0, %v1034_v33, %v1035_v35  ;;  %v1037_v39 = vsel %vm481_vm0, %v1035_v35, %v1034_v33  ;;  %v1042_v40 = vsel %vm498_vm4, %v1040_v34, %v1041_v36  ;;  %v1043_v41 = vsel %vm498_vm4, %v1041_v36, %v1040_v34  ;;  %1281 = vmatprep.mubr.bf16.mxu0 %v1047_v37 }
 0x205   : > { %v1527_v42 = vpack.c.bf16 %v1036_v38, %v1037_v39  ;;  %v1531_v43 = vpack.c.bf16 %v1043_v41, %v1042_v40 }
 0x207   : > { %1528 = vmatmul.mubr.msk.bf16.vlgmr.msra.gmra.mrb[8].mxu0 %vm1991_vm3, %v1527_v42  ;;  %1651 = vmatmul.mubr.msk.bf16.vlgmr.msra.gmra.mrb[8].mxu1 %vm2003_vm6, %v1531_v43 }
 0x2da   : > { %v1619_v44 = vpop.f32.mrb[8].mxu0  ;;  %v1324_v45 = vpop.f32.mrb[8].mxu1 }
 0x2db   : > { %v1620_v47 = vpop.f32.mrb[9].mxu0  ;;  %v1652_v48 = vpop.f32.mrb[9].mxu1 }
 0x2dc   : > { %v1621_v52 = vadd.f32 %v1620_v47, %v1619_v44  ;;  %v1622_v49 = vpop.f32.mrb[10].mxu0  ;;  %v1327_v50 = vpop.f32.mrb[10].mxu1 }
 0x2dd   : > { %v1623_v51 = vpop.f32.mrb[11].mxu0  ;;  %v1653_v53 = vpop.f32.mrb[11].mxu1 }
 0x2de   : > { %v1284_v54 = vadd.f32 %v1621_v52, %v1500_v46  ;;  %v1624_v60 = vadd.f32 %v1623_v51, %v1622_v49 }
 0x2e0   : > { %v1325_v55 = vadd.f32 %v1324_v45, %v1284_v54  ;;  %v1287_v56 = vadd.f32 %v1624_v60, %v1500_v46 }
 0x2e2   : > { %v1331_v4 = vmax.f32 %v1325_v55, 0.0  ;;  %v1328_v57 = vadd.f32 %v1327_v50, %v1287_v56 }
 0x2e4   : > { %1333 = vst [vmem:[%s275_s20] sm:$0xff] %v1331_v4  ;;  %v1332_v58 = vmax.f32 %v1328_v57, 0.0 }
 0x2e6   : > { %1334 = vst [vmem:[%s275_s20 + $0x8] sm:$0xff] %v1332_v58 }
 0x2e7 PF: > { %s16_s21 = sadd.s32 1, %s1771_s21  }
 0x2e8   : > { %p13_p4 = scmp.ge.s32.totalorder %s16_s21, 4  }
 0x2ea   :  { %15 = sbr.rel (!%p13_p4) target bundleno = 1 (0x1), region = 79 }

</bundles_post_ra>
